<compile_context>
chip_gen: v6e
topology: v6e:2x2x1
jax: 0.10.0
libtpu: 0.0.40
codegen_flags: <defaults>
</compile_context>

<pallas_src>
import jax
import jax.numpy as jnp
from jax.experimental import pallas as pl
from jax.experimental.pallas import tpu as pltpu

LANE = 128  # TPU lane width: last-dim alignment target for the output store


def _round_up(x, m):
    return ((x + m - 1) // m) * m


def mlp_kernel(x_ref,
               w1_ref, b1_ref,
               w2_ref, b2_ref,
               w3_ref, b3_ref,
               w4_ref, b4_ref,
               w5_ref, b5_ref,
               o_ref):
    """Fused 5-layer MLP on one batch tile.

    Weights/biases are full-array, VMEM-resident blocks. Matmuls feed the MXU in
    the weights' dtype (bf16) with f32 accumulation; bias add + ReLU run in f32
    on the VPU.
    """

    def layer(h, w_ref, b_ref, relu):
        acc = jnp.dot(h.astype(w_ref.dtype), w_ref[...],
                      preferred_element_type=jnp.float32) + b_ref[...]
        return jnp.maximum(acc, 0.0) if relu else acc

    h = x_ref[...]                       # bf16 tile, native 32-wide contraction dim
    h = layer(h, w1_ref, b1_ref, relu=True)
    h = layer(h, w2_ref, b2_ref, relu=True)
    h = layer(h, w3_ref, b3_ref, relu=True)
    h = layer(h, w4_ref, b4_ref, relu=True)
    out = layer(h, w5_ref, b5_ref, relu=False)
    o_ref[...] = out.astype(o_ref.dtype)


def class0_mlp_forward(x, params, *, tb=512,
                       compute_dtype=jnp.bfloat16, out_dtype=jnp.float32):
    """x: [B, input_size]. params: list of (W[in, out], b[1, out]) float32.

    Returns [B, num_classes] `out_dtype` logits (eval-mode forward of Class0_MLP).
    Note: matmul inputs are quantized to bf16 (documented precision deviation from
    the f32 PyTorch module); accumulation, bias and ReLU are f32.
    """
    B, in_features = x.shape
    num_classes = params[-1][0].shape[1]
    n_layers = len(params)

    # --- Prep weights: keep every contraction dim exact; pad ONLY the final
    # class dim to 128 lanes so the output store is lane-dense. Zero weight
    # columns / zero bias entries leave the real logits unchanged. ---
    prepped = []
    for idx, (w, b) in enumerate(params):
        din, dout = w.shape
        if idx == n_layers - 1:
            dout_p = _round_up(dout, LANE)
            if dout_p != dout:
                w = jnp.zeros((din, dout_p), w.dtype).at[:, :dout].set(w)
                b = jnp.zeros((1, dout_p), b.dtype).at[:, :dout].set(b)
        prepped.append(w.astype(compute_dtype))   # bf16 for the MXU
        prepped.append(b.astype(jnp.float32))     # f32 bias (VPU add)
    out_p = prepped[-2].shape[1]

    # --- Input: bf16 at the boundary (it is cast at the first dot anyway);
    # no batch padding, no feature padding. ---
    x = x.astype(compute_dtype)

    # --- Batch tiling: large tiles for HBM efficiency, clamped to what B needs;
    # ensure >= 2 grid steps when B is big enough to feed both v7x TensorCores. ---
    tb = max(8, min(tb, _round_up(B, 8)))
    if B >= 2 * 256 and pl.cdiv(B, tb) < 2:
        tb = _round_up(pl.cdiv(B, 2), 8)
    grid = (pl.cdiv(B, tb),)
    # TODO(synk): tail rows of a ragged last block hold unspecified data; they are
    # row-local and discarded by the caller, but add a pl.when + iota row mask if
    # strict NaN hygiene on the padded rows is ever required.

    def resident(shape):
        # Full-array block with a constant index_map -> DMA'd once, VMEM-resident.
        return pl.BlockSpec(shape, lambda i: (0,) * len(shape))

    in_specs = [pl.BlockSpec((tb, in_features), lambda i: (i, 0))]
    for p in prepped:
        in_specs.append(resident(p.shape))
    out_specs = pl.BlockSpec((tb, out_p), lambda i: (i, 0))

    weight_mats = prepped[0::2]
    flops = 2 * B * sum(w.shape[0] * w.shape[1] for w in weight_mats)
    bytes_accessed = (int(x.size) * x.dtype.itemsize
                      + B * out_p * jnp.dtype(out_dtype).itemsize
                      + sum(int(p.size) * p.dtype.itemsize for p in prepped))

    out = pl.pallas_call(
        mlp_kernel,
        out_shape=jax.ShapeDtypeStruct((B, out_p), out_dtype),
        grid=grid,
        in_specs=in_specs,
        out_specs=out_specs,
        compiler_params=pltpu.CompilerParams(
            dimension_semantics=("parallel",),     # shard batch tiles across v7x TCs
            vmem_limit_bytes=32 * 1024 * 1024),    # generous; ~2-4 MiB actually used
        cost_estimate=pl.CostEstimate(
            flops=flops, transcendentals=0, bytes_accessed=bytes_accessed),
    )(x, *prepped)

    return out[:, :num_classes]


def init_params(key, input_size, num_classes):
    """Deterministic init; Linear weights stored as [in, out], biases as [1, out]."""
    dims = [(input_size, 128), (128, 256), (256, 128), (128, 64), (64, num_classes)]
    params = []
    for i, (din, dout) in enumerate(dims):
        kw, kb, key = jax.random.split(jax.random.fold_in(key, i), 3)
        bound = 1.0 / jnp.sqrt(din)
        w = jax.random.uniform(kw, (din, dout), jnp.float32, -bound, bound)
        b = jax.random.uniform(kb, (1, dout), jnp.float32, -bound, bound)
        params.append((w, b))
    return params


def reference_forward(x, params, compute_dtype=jnp.float32):
    """Pure-JAX reference. compute_dtype mimics the kernel's matmul-input dtype."""
    h = x.astype(jnp.float32)
    for i, (w, b) in enumerate(params):
        h = jnp.dot(h.astype(compute_dtype), w.astype(compute_dtype),
                    preferred_element_type=jnp.float32) + b.astype(jnp.float32)
        if i < len(params) - 1:
            h = jnp.maximum(h, 0.0)
    return h


if __name__ == "__main__":
    key = jax.random.PRNGKey(0)
    B, input_size, num_classes = 8, 32, 10

    kx, kp = jax.random.split(key)
    x = jax.random.normal(kx, (B, input_size), jnp.float32)
    params = init_params(kp, input_size, num_classes)

    out = class0_mlp_forward(x, params)
    out = jax.block_until_ready(out)
    assert out.shape == (B, num_classes)
    assert bool(jnp.all(jnp.isfinite(out))), "non-finite logits"

    # Tight check against a reference that uses the same bf16-at-the-dot scheme.
    ref_bf16 = reference_forward(x, params, compute_dtype=jnp.bfloat16)
    assert jnp.allclose(out, ref_bf16, atol=2e-3, rtol=1e-3), "mismatch vs bf16 reference"

    # Loose sanity check against the full-f32 module semantics (bf16 quantization noise).
    ref_f32 = reference_forward(x, params, compute_dtype=jnp.float32)
    assert jnp.allclose(out, ref_f32, atol=5e-2, rtol=5e-2), "mismatch vs f32 reference"

    print("KERNEL_OK")
</pallas_src>

<mosaic_0001>
module attributes {stable_mosaic.version = 11 : i64} {
  func.func @mlp_kernel(%arg0: i32, %arg1: memref<8x32xbf16, #tpu.memory_space<vmem>>, %arg2: memref<32x128xbf16, #tpu.memory_space<vmem>>, %arg3: memref<1x128xf32, #tpu.memory_space<vmem>>, %arg4: memref<128x256xbf16, #tpu.memory_space<vmem>>, %arg5: memref<1x256xf32, #tpu.memory_space<vmem>>, %arg6: memref<256x128xbf16, #tpu.memory_space<vmem>>, %arg7: memref<1x128xf32, #tpu.memory_space<vmem>>, %arg8: memref<128x64xbf16, #tpu.memory_space<vmem>>, %arg9: memref<1x64xf32, #tpu.memory_space<vmem>>, %arg10: memref<64x128xbf16, #tpu.memory_space<vmem>>, %arg11: memref<1x128xf32, #tpu.memory_space<vmem>>, %arg12: memref<8x128xf32, #tpu.memory_space<vmem>>) attributes {dimension_semantics = [#tpu.dimension_semantics<parallel>], iteration_bounds = array<i64: 1>, scalar_prefetch = 0 : i64, scratch_operands = 0 : i64, tpu.core_type = #tpu.core_type<tc>, window_params = [{transform_indices = @transform_0, window_bounds = array<i64: 8, 32>}, {pipeline_mode = #tpu.pipeline_mode<synchronous>, transform_indices = @transform_1, window_bounds = array<i64: 32, 128>}, {pipeline_mode = #tpu.pipeline_mode<synchronous>, transform_indices = @transform_2, window_bounds = array<i64: 1, 128>}, {pipeline_mode = #tpu.pipeline_mode<synchronous>, transform_indices = @transform_3, window_bounds = array<i64: 128, 256>}, {pipeline_mode = #tpu.pipeline_mode<synchronous>, transform_indices = @transform_4, window_bounds = array<i64: 1, 256>}, {pipeline_mode = #tpu.pipeline_mode<synchronous>, transform_indices = @transform_5, window_bounds = array<i64: 256, 128>}, {pipeline_mode = #tpu.pipeline_mode<synchronous>, transform_indices = @transform_6, window_bounds = array<i64: 1, 128>}, {pipeline_mode = #tpu.pipeline_mode<synchronous>, transform_indices = @transform_7, window_bounds = array<i64: 128, 64>}, {pipeline_mode = #tpu.pipeline_mode<synchronous>, transform_indices = @transform_8, window_bounds = array<i64: 1, 64>}, {pipeline_mode = #tpu.pipeline_mode<synchronous>, transform_indices = @transform_9, window_bounds = array<i64: 64, 128>}, {pipeline_mode = #tpu.pipeline_mode<synchronous>, transform_indices = @transform_10, window_bounds = array<i64: 1, 128>}, {transform_indices = @transform_11, window_bounds = array<i64: 8, 128>}]} {
    %c0 = arith.constant 0 : index
    %c0_0 = arith.constant 0 : index
    %0 = vector.load %arg1[%c0, %c0_0] : memref<8x32xbf16, #tpu.memory_space<vmem>>, vector<8x32xbf16>
    %c0_1 = arith.constant 0 : index
    %c0_2 = arith.constant 0 : index
    %1 = vector.load %arg2[%c0_1, %c0_2] : memref<32x128xbf16, #tpu.memory_space<vmem>>, vector<32x128xbf16>
    %cst = arith.constant dense<0.000000e+00> : vector<8x128xf32>
    %2 = tpu.matmul %0, %1, %cst {dimension_numbers = #tpu.dot_dimension_numbers<[1], [0], [0], [1], [0, 0, 1, 1], [], []>} : vector<8x32xbf16>, vector<32x128xbf16>, vector<8x128xf32> -> vector<8x128xf32>
    %c0_3 = arith.constant 0 : index
    %c0_4 = arith.constant 0 : index
    %3 = vector.load %arg3[%c0_3, %c0_4] : memref<1x128xf32, #tpu.memory_space<vmem>>, vector<1x128xf32>
    %4 = vector.broadcast %3 : vector<1x128xf32> to vector<8x128xf32>
    %5 = arith.addf %2, %4 : vector<8x128xf32>
    %cst_5 = arith.constant 0.000000e+00 : f32
    %6 = vector.broadcast %cst_5 : f32 to vector<8x128xf32>
    %7 = arith.maximumf %5, %6 : vector<8x128xf32>
    %8 = arith.truncf %7 : vector<8x128xf32> to vector<8x128xbf16>
    %c0_6 = arith.constant 0 : index
    %c0_7 = arith.constant 0 : index
    %9 = vector.load %arg4[%c0_6, %c0_7] : memref<128x256xbf16, #tpu.memory_space<vmem>>, vector<128x256xbf16>
    %cst_8 = arith.constant dense<0.000000e+00> : vector<8x256xf32>
    %10 = tpu.matmul %8, %9, %cst_8 {dimension_numbers = #tpu.dot_dimension_numbers<[1], [0], [0], [1], [0, 0, 1, 1], [], []>} : vector<8x128xbf16>, vector<128x256xbf16>, vector<8x256xf32> -> vector<8x256xf32>
    %c0_9 = arith.constant 0 : index
    %c0_10 = arith.constant 0 : index
    %11 = vector.load %arg5[%c0_9, %c0_10] : memref<1x256xf32, #tpu.memory_space<vmem>>, vector<1x256xf32>
    %12 = vector.broadcast %11 : vector<1x256xf32> to vector<8x256xf32>
    %13 = arith.addf %10, %12 : vector<8x256xf32>
    %cst_11 = arith.constant 0.000000e+00 : f32
    %14 = vector.broadcast %cst_11 : f32 to vector<8x256xf32>
    %15 = arith.maximumf %13, %14 : vector<8x256xf32>
    %16 = arith.truncf %15 : vector<8x256xf32> to vector<8x256xbf16>
    %c0_12 = arith.constant 0 : index
    %c0_13 = arith.constant 0 : index
    %17 = vector.load %arg6[%c0_12, %c0_13] : memref<256x128xbf16, #tpu.memory_space<vmem>>, vector<256x128xbf16>
    %cst_14 = arith.constant dense<0.000000e+00> : vector<8x128xf32>
    %18 = tpu.matmul %16, %17, %cst_14 {dimension_numbers = #tpu.dot_dimension_numbers<[1], [0], [0], [1], [0, 0, 1, 1], [], []>} : vector<8x256xbf16>, vector<256x128xbf16>, vector<8x128xf32> -> vector<8x128xf32>
    %c0_15 = arith.constant 0 : index
    %c0_16 = arith.constant 0 : index
    %19 = vector.load %arg7[%c0_15, %c0_16] : memref<1x128xf32, #tpu.memory_space<vmem>>, vector<1x128xf32>
    %20 = vector.broadcast %19 : vector<1x128xf32> to vector<8x128xf32>
    %21 = arith.addf %18, %20 : vector<8x128xf32>
    %cst_17 = arith.constant 0.000000e+00 : f32
    %22 = vector.broadcast %cst_17 : f32 to vector<8x128xf32>
    %23 = arith.maximumf %21, %22 : vector<8x128xf32>
    %24 = arith.truncf %23 : vector<8x128xf32> to vector<8x128xbf16>
    %c0_18 = arith.constant 0 : index
    %c0_19 = arith.constant 0 : index
    %25 = vector.load %arg8[%c0_18, %c0_19] : memref<128x64xbf16, #tpu.memory_space<vmem>>, vector<128x64xbf16>
    %cst_20 = arith.constant dense<0.000000e+00> : vector<8x64xf32>
    %26 = tpu.matmul %24, %25, %cst_20 {dimension_numbers = #tpu.dot_dimension_numbers<[1], [0], [0], [1], [0, 0, 1, 1], [], []>} : vector<8x128xbf16>, vector<128x64xbf16>, vector<8x64xf32> -> vector<8x64xf32>
    %c0_21 = arith.constant 0 : index
    %c0_22 = arith.constant 0 : index
    %27 = vector.load %arg9[%c0_21, %c0_22] : memref<1x64xf32, #tpu.memory_space<vmem>>, vector<1x64xf32>
    %28 = vector.broadcast %27 : vector<1x64xf32> to vector<8x64xf32>
    %29 = arith.addf %26, %28 : vector<8x64xf32>
    %cst_23 = arith.constant 0.000000e+00 : f32
    %30 = vector.broadcast %cst_23 : f32 to vector<8x64xf32>
    %31 = arith.maximumf %29, %30 : vector<8x64xf32>
    %32 = arith.truncf %31 : vector<8x64xf32> to vector<8x64xbf16>
    %c0_24 = arith.constant 0 : index
    %c0_25 = arith.constant 0 : index
    %33 = vector.load %arg10[%c0_24, %c0_25] : memref<64x128xbf16, #tpu.memory_space<vmem>>, vector<64x128xbf16>
    %cst_26 = arith.constant dense<0.000000e+00> : vector<8x128xf32>
    %34 = tpu.matmul %32, %33, %cst_26 {dimension_numbers = #tpu.dot_dimension_numbers<[1], [0], [0], [1], [0, 0, 1, 1], [], []>} : vector<8x64xbf16>, vector<64x128xbf16>, vector<8x128xf32> -> vector<8x128xf32>
    %c0_27 = arith.constant 0 : index
    %c0_28 = arith.constant 0 : index
    %35 = vector.load %arg11[%c0_27, %c0_28] : memref<1x128xf32, #tpu.memory_space<vmem>>, vector<1x128xf32>
    %36 = vector.broadcast %35 : vector<1x128xf32> to vector<8x128xf32>
    %37 = arith.addf %34, %36 : vector<8x128xf32>
    %c0_29 = arith.constant 0 : index
    %c0_30 = arith.constant 0 : index
    %38 = vector.load %arg12[%c0_29, %c0_30] : memref<8x128xf32, #tpu.memory_space<vmem>>, vector<8x128xf32>
    tpu.vector_store %arg12[%c0_29, %c0_30], %37 {strides = array<i32>} : memref<8x128xf32, #tpu.memory_space<vmem>>, vector<8x128xf32>,
    return
  }
  func.func @transform_0(%arg0: i32) -> (i32, i32) {
    %c0_i32 = arith.constant 0 : i32
    %c0_i32_0 = arith.constant 0 : i32
    return %arg0, %c0_i32 : i32, i32
  }
  func.func @transform_1(%arg0: i32) -> (i32, i32) {
    %c0_i32 = arith.constant 0 : i32
    %c0_i32_0 = arith.constant 0 : i32
    %c0_i32_1 = arith.constant 0 : i32
    return %c0_i32, %c0_i32_0 : i32, i32
  }
  func.func @transform_2(%arg0: i32) -> (i32, i32) {
    %c0_i32 = arith.constant 0 : i32
    %c0_i32_0 = arith.constant 0 : i32
    %c0_i32_1 = arith.constant 0 : i32
    return %c0_i32, %c0_i32_0 : i32, i32
  }
  func.func @transform_3(%arg0: i32) -> (i32, i32) {
    %c0_i32 = arith.constant 0 : i32
    %c0_i32_0 = arith.constant 0 : i32
    %c0_i32_1 = arith.constant 0 : i32
    return %c0_i32, %c0_i32_0 : i32, i32
  }
  func.func @transform_4(%arg0: i32) -> (i32, i32) {
    %c0_i32 = arith.constant 0 : i32
    %c0_i32_0 = arith.constant 0 : i32
    %c0_i32_1 = arith.constant 0 : i32
    return %c0_i32, %c0_i32_0 : i32, i32
  }
  func.func @transform_5(%arg0: i32) -> (i32, i32) {
    %c0_i32 = arith.constant 0 : i32
    %c0_i32_0 = arith.constant 0 : i32
    %c0_i32_1 = arith.constant 0 : i32
    return %c0_i32, %c0_i32_0 : i32, i32
  }
  func.func @transform_6(%arg0: i32) -> (i32, i32) {
    %c0_i32 = arith.constant 0 : i32
    %c0_i32_0 = arith.constant 0 : i32
    %c0_i32_1 = arith.constant 0 : i32
    return %c0_i32, %c0_i32_0 : i32, i32
  }
  func.func @transform_7(%arg0: i32) -> (i32, i32) {
    %c0_i32 = arith.constant 0 : i32
    %c0_i32_0 = arith.constant 0 : i32
    %c0_i32_1 = arith.constant 0 : i32
    return %c0_i32, %c0_i32_0 : i32, i32
  }
  func.func @transform_8(%arg0: i32) -> (i32, i32) {
    %c0_i32 = arith.constant 0 : i32
    %c0_i32_0 = arith.constant 0 : i32
    %c0_i32_1 = arith.constant 0 : i32
    return %c0_i32, %c0_i32_0 : i32, i32
  }
  func.func @transform_9(%arg0: i32) -> (i32, i32) {
    %c0_i32 = arith.constant 0 : i32
    %c0_i32_0 = arith.constant 0 : i32
    %c0_i32_1 = arith.constant 0 : i32
    return %c0_i32, %c0_i32_0 : i32, i32
  }
  func.func @transform_10(%arg0: i32) -> (i32, i32) {
    %c0_i32 = arith.constant 0 : i32
    %c0_i32_0 = arith.constant 0 : i32
    %c0_i32_1 = arith.constant 0 : i32
    return %c0_i32, %c0_i32_0 : i32, i32
  }
  func.func @transform_11(%arg0: i32) -> (i32, i32) {
    %c0_i32 = arith.constant 0 : i32
    %c0_i32_0 = arith.constant 0 : i32
    return %arg0, %c0_i32 : i32, i32
  }
}

</mosaic_0001>

<bundles_post_ra>
// kernel: tpu_custom_call.1
= control target key start
LH: loop header
LB: loop body
LE: loop exit
PB: predicated region body
PF: predicated region fallthrough
CT: control target
= control target key end

     0   :  { %16 = vsyncpa [#allocation3], 0  ;;  %s1101_s0 = inlined_call_operand.vmem [shape: bf16[8,32], index: 0, kind: input, shape index: {}]   ;;  %s1102_s1 = inlined_call_operand.vmem [shape: bf16[32,128], index: 1, kind: input, shape index: {}]   ;;  %s1103_s2 = inlined_call_operand.vmem [shape: f32[1,128], index: 2, kind: input, shape index: {}]   ;;  %s1104_s3 = inlined_call_operand.hbm [shape: bf16[128,256], index: 3, kind: input, shape index: {}]   ;;  %s1105_s4 = inlined_call_operand.vmem [shape: f32[1,256], index: 4, kind: input, shape index: {}]   ;;  %s1106_s5 = inlined_call_operand.hbm [shape: bf16[256,128], index: 5, kind: input, shape index: {}]   ;;  %s1107_s6 = inlined_call_operand.vmem [shape: f32[1,128], index: 6, kind: input, shape index: {}]   ;;  %s1108_s7 = inlined_call_operand.vmem [shape: bf16[128,64], index: 7, kind: input, shape index: {}]   ;;  %s1109_s8 = inlined_call_operand.vmem [shape: f32[1,64], index: 8, kind: input, shape index: {}]   ;;  %s1110_s9 = inlined_call_operand.vmem [shape: bf16[64,128], index: 9, kind: input, shape index: {}]   ;;  %s1111_s10 = inlined_call_operand.vmem [shape: f32[1,128], index: 10, kind: input, shape index: {}]   ;;  %s1112_s11 = inlined_call_operand.hbm [shape: f32[8,128], index: 11, kind: output, shape index: {}]  }
   0x1   :  { %17 = vsyncpa [#allocation6], 0 }
   0x2   :  { %18 = vsyncpa [#allocation4], 0  ;;  %s942_s17 = smov [#allocation2]  }
   0x3   :  { %s30_s18 = sshll.u32 %s942_s17, 4  ;;  %s31_s18 = int_to_ptr.vmem [resolvable:$true] %s30_s18 }
   0x4   :  { %s884_s19 = scalar_lea.vmem %s31_s18, 2048  ;;  %p889_p1 = scmp.lt.s32.totalorder %s31_s18, %s31_s18 }
   0x5   :  { %p885_p0 = scmp.ne.s32.totalorder %s31_s18, %s884_s19  ;;  %p890_p2 = scmp.lt.s32.totalorder %s884_s19, %s884_s19 }
   0x7   :  { %p891_p3 = por %p890_p2, %p889_p1 }
   0x9   :  { %p892_p4 = pnand %p891_p3, %p885_p0 }
   0xb   :  { %895 = shalt.err (!%p892_p4)
}
   0xc   :  { %s943_s20 = smov 128   ;;  %s944_s21 = smov 8  }
   0xd   :  { %36 = dma.hbm_to_vmem [thread:$0]  %s1104_s3, 2048, %s31_s18, [#allocation3], %s943_s20, %s943_s20, %s944_s21  }
   0xe   :  { %s945_s24 = smov [#allocation5]  }
   0xf   :  { %s44_s25 = sshll.u32 %s945_s24, 4  ;;  %s45_s25 = int_to_ptr.vmem [resolvable:$true] %s44_s25 }
  0x10   :  { %s904_s26 = scalar_lea.vmem %s45_s25, 2048  ;;  %p909_p6 = scmp.lt.s32.totalorder %s45_s25, %s45_s25 }
  0x11   :  { %p905_p5 = scmp.ne.s32.totalorder %s45_s25, %s904_s26  ;;  %p910_p7 = scmp.lt.s32.totalorder %s904_s26, %s904_s26 }
  0x13   :  { %p911_p8 = por %p910_p7, %p909_p6 }
  0x15   :  { %p912_p9 = pnand %p911_p8, %p905_p5 }
  0x17   :  { %915 = shalt.err (!%p912_p9)
}
  0x18   :  { %s946_s27 = smov 64   ;;  %s947_s28 = smov 4  }
  0x19   :  { %50 = dma.hbm_to_vmem [thread:$0]  %s1106_s5, 2048, %s45_s25, [#allocation6], %s946_s27, %s946_s27, %s947_s28  }
  0x1a   :  { %936 = dma.done.wait [#allocation3], 2048  }
  0x1b   :  { %937 = vsyncadd [#allocation3], 4294965248 }
  0x1c   :  { %938 = dma.done.wait [#allocation6], 2048  }
  0x1d   :  { %939 = vsyncadd [#allocation6], 4294965248  ;;  %v948_v0 = vmov 0.0   ;;  %vm949_vm0 = vmmov 0   ;;  %v822_v1 = vld [vmem:[%s1102_s1 + $0x8] sm:$0xff]   ;;  %v823_v2 = vld [vmem:[%s1102_s1] sm:$0xff]   ;;  %v156_v50 = vlaneseq }
  0x1e   :  { %772 = vmatprep.subr.bf16.mxu0 %v948_v0  ;;  %776 = vmatprep.mubr.msk.bf16.mxu0 %vm949_vm0, %v948_v0  ;;  %v824_v3 = vld [vmem:[#allocation2 + $0x74] ss:$8 sps:$4 sm:$0xff]   ;;  %v826_v4 = vld [vmem:[#allocation2 + $0x70] ss:$8 sps:$4 sm:$0xff]   ;;  %v827_v5 = vld [vmem:[#allocation2 + $0x64] ss:$8 sps:$4 sm:$0xff]  }
  0x1f   :  { %773 = vmatpush3.bf16.msra.mxu0 %v822_v1  ;;  %v68_v6 = vld [vmem:[%s1101_s0] sm:$0xf]  ;;  %246 = vmatprep.subr.bf16.mxu1 %v824_v3  ;;  %vm92_vm1 = vcmask 261120   ;;  %v830_v8 = vld [vmem:[#allocation2 + $0x54] ss:$8 sps:$4 sm:$0xff]   ;;  %v950_v20 = vmov 0  }
  0x20   :  { %774 = vmatprep.subr.bf16.mxu0 %v948_v0  ;;  %247 = vmatpush1.bf16.msra.mxu1 %v826_v4  ;;  %v829_v7 = vld [vmem:[#allocation2 + $0x60] ss:$8 sps:$4 sm:$0xff]   ;;  %v832_v9 = vld [vmem:[#allocation2 + $0x50] ss:$8 sps:$4 sm:$0xff]   ;;  %v833_v10 = vld [vmem:[#allocation2 + $0x44] ss:$8 sps:$4 sm:$0xff]  }
  0x21   :  { %248 = vmatprep.subr.bf16.mxu1 %v827_v5  ;;  %v835_v11 = vld [vmem:[#allocation2 + $0x40] ss:$8 sps:$4 sm:$0xff]   ;;  %v836_v12 = vld [vmem:[#allocation2 + $0x34] ss:$8 sps:$4 sm:$0xff]   ;;  %v838_v13 = vld [vmem:[#allocation2 + $0x30] ss:$8 sps:$4 sm:$0xff]   ;;  %278 = vmatprep.mubr.bf16.mxu1 %v950_v20 }
  0x22   :  { %v839_v14 = vld [vmem:[#allocation2 + $0x24] ss:$8 sps:$4 sm:$0xff]   ;;  %v841_v15 = vld [vmem:[#allocation2 + $0x20] ss:$8 sps:$4 sm:$0xff]   ;;  %v842_v16 = vld [vmem:[#allocation2 + $0x14] ss:$8 sps:$4 sm:$0xff]  }
  0x23   :  { %775 = vmatpush3.bf16.msra.mxu0 %v823_v2  ;;  %v844_v17 = vld [vmem:[#allocation2 + $0x10] ss:$8 sps:$4 sm:$0xff]   ;;  %v845_v18 = vld [vmem:[#allocation2 + $0x4] ss:$8 sps:$4 sm:$0xff]   ;;  %v847_v19 = vld [vmem:[#allocation2] ss:$8 sps:$4 sm:$0xff]  }
  0x24   :  { %249 = vmatpush1.bf16.msra.mxu1 %v829_v7  ;;  %v848_v21 = vld [vmem:[#allocation5 + $0x78] sm:$0xff]   ;;  %v850_v23 = vld [vmem:[#allocation5 + $0x70] sm:$0xff]   ;;  %v852_v25 = vld [vmem:[#allocation5 + $0x68] sm:$0xff]   ;;  %v157_v51 = vshrl.u32 %v156_v50, 7  ;;  %vm620_vm2 = vcmask 523264   ;;  %s951_s20 = smov [#allocation7]  }
  0x25   :  { %250 = vmatprep.subr.bf16.mxu1 %v830_v8  ;;  %v849_v22 = vld [vmem:[#allocation5 + $0x38] sm:$0xff]   ;;  %736 = vmatprep.subr.bf16.mxu0 %v848_v21  ;;  %v851_v24 = vld [vmem:[#allocation5 + $0x30] sm:$0xff]   ;;  %v853_v26 = vld [vmem:[#allocation5 + $0x28] sm:$0xff]  }
  0x26   :  { %777 = vmatmul.mubr.msk.bf16.vlgmr.msra.gmra.mxu0 %vm92_vm1, %v68_v6  ;;  %v854_v27 = vld [vmem:[#allocation5 + $0x60] sm:$0xff]   ;;  %v856_v29 = vld [vmem:[#allocation5 + $0x58] sm:$0xff]   ;;  %v858_v31 = vld [vmem:[#allocation5 + $0x50] sm:$0xff]   ;;  %v158_v52 = vsub.s32 0, %v157_v51  ;;  %v162_v54 = vsub.s32 1, %v157_v51 }
  0x27   :  { %737 = vmatpush3.bf16.msra.mxu0 %v849_v22  ;;  %v855_v28 = vld [vmem:[#allocation5 + $0x20] sm:$0xff]   ;;  %v857_v30 = vld [vmem:[#allocation5 + $0x18] sm:$0xff]   ;;  %v859_v32 = vld [vmem:[#allocation5 + $0x10] sm:$0xff]  }
  0x28   :  { %251 = vmatpush1.bf16.msra.mxu1 %v832_v9  ;;  %738 = vmatprep.subr.bf16.mxu0 %v850_v23  ;;  %v681_v33 = vld [vmem:[%s1103_s2] ss:$0 sm:$0xff]  ;;  %v860_v41 = vld [vmem:[#allocation5 + $0x48] sm:$0xff]   ;;  %v864_v45 = vld [vmem:[%s1108_s7 + $0x38] sm:$0xff]  }
  0x29   :  { %252 = vmatprep.subr.bf16.mxu1 %v833_v10  ;;  %v861_v42 = vld [vmem:[#allocation5 + $0x8] sm:$0xff]   ;;  %v862_v43 = vld [vmem:[#allocation5 + $0x40] sm:$0xff]   ;;  %v865_v46 = vld [vmem:[%s1108_s7 + $0x30] sm:$0xff]  }
  0x2a   :  { %v863_v44 = vld [vmem:[#allocation5] sm:$0xff]   ;;  %v866_v47 = vld [vmem:[%s1108_s7 + $0x28] sm:$0xff]   ;;  %v868_v49 = vld [vmem:[%s1108_s7 + $0x18] sm:$0xff]  }
  0x2b   :  { %739 = vmatpush3.bf16.msra.mxu0 %v851_v24  ;;  %v867_v48 = vld [vmem:[%s1108_s7 + $0x20] sm:$0xff]   ;;  %v869_v4 = vld [vmem:[%s1108_s7 + $0x10] sm:$0xff]   ;;  %v870_v5 = vld [vmem:[%s1108_s7 + $0x8] sm:$0xff]  }
  0x2c   :  { %253 = vmatpush1.bf16.msra.mxu1 %v835_v11  ;;  %740 = vmatprep.subr.bf16.mxu0 %v852_v25  ;;  %v154_v53 = vld [vmem:[%s1105_s4] sm:$0x3]  ;;  %v872_v7 = vld [vmem:[%s1110_s9 + $0x18] sm:$0xff]   ;;  %v873_v8 = vld [vmem:[%s1110_s9 + $0x10] sm:$0xff]  }
  0x2d   :  { %254 = vmatprep.subr.bf16.mxu1 %v836_v12  ;;  %v159_v55 = vrot.slane %v154_v53, %v158_v52  ;;  %v163_v56 = vrot.slane %v154_v53, %v162_v54  ;;  %v871_v6 = vld [vmem:[%s1108_s7] sm:$0xff]  }
  0x2e   :  { %v701_v10 = vld [vmem:[%s1107_s6] ss:$0 sm:$0xff] }
  0x2f   :  { %741 = vmatpush3.bf16.msra.mxu0 %v853_v26  ;;  %v718_v20 = vld [vmem:[%s1109_s8] ss:$0 sm:$0xff] }
  0x30   :  { %255 = vmatpush1.bf16.msra.mxu1 %v838_v13  ;;  %742 = vmatprep.subr.bf16.mxu0 %v854_v27 }
  0x31   :  { %256 = vmatprep.subr.bf16.mxu1 %v839_v14 }
  0x33   :  { %743 = vmatpush3.bf16.msra.mxu0 %v855_v28 }
  0x34   :  { %257 = vmatpush1.bf16.msra.mxu1 %v841_v15  ;;  %744 = vmatprep.subr.bf16.mxu0 %v856_v29 }
  0x35   :  { %258 = vmatprep.subr.bf16.mxu1 %v842_v16 }
  0x37   :  { %745 = vmatpush3.bf16.msra.mxu0 %v857_v30 }
  0x38   :  { %259 = vmatpush1.bf16.msra.mxu1 %v844_v17  ;;  %746 = vmatprep.subr.bf16.mxu0 %v858_v31 }
  0x39   :  { %260 = vmatprep.subr.bf16.mxu1 %v845_v18  ;;  %v874_v18 = vld [vmem:[%s1110_s9 + $0x8] sm:$0xff]  }
  0x3b   :  { %747 = vmatpush3.bf16.msra.mxu0 %v859_v32 }
  0x3c   :  { %261 = vmatpush1.bf16.msra.mxu1 %v847_v19  ;;  %748 = vmatprep.subr.bf16.mxu0 %v860_v41  ;;  %v875_v19 = vld [vmem:[%s1110_s9] sm:$0xff]   ;;  %s671_s9 = sshll.u32 %s951_s20, 4  ;;  %s672_s9 = int_to_ptr.vmem [resolvable:$true] %s671_s9 }
  0x3d   :  { %780 = vmatprep.subr.bf16.mxu1 %v948_v0  ;;  %s916_s8 = scalar_lea.vmem %s672_s9, 128  ;;  %p921_p11 = scmp.lt.s32.totalorder %s672_s9, %s672_s9 }
  0x3e   :  { %p917_p10 = scmp.ne.s32.totalorder %s672_s9, %s916_s8  ;;  %p922_p12 = scmp.lt.s32.totalorder %s916_s8, %s916_s8 }
  0x3f   :  { %749 = vmatpush3.bf16.msra.mxu0 %v861_v42 }
  0x40   :  { %750 = vmatprep.subr.bf16.mxu0 %v862_v43  ;;  %p923_p13 = por %p922_p12, %p921_p11 }
  0x42   :  { %p924_p0 = pnand %p923_p13, %p917_p10 }
  0x43   :  { %751 = vmatpush3.bf16.msra.mxu0 %v863_v44 }
  0x44   :  { %800 = vmatprep.subr.bf16.mxu0 %v948_v0 }
  0xe6   :  { %v130_v34 = vpop.f32.mrf.mxu0 }
  0xe7   :  { %v131_v35 = vadd.f32 %v681_v33, %v130_v34 }
  0xe8   :  { %v778_v36 = vpop.f32.mrf.mxu0 }
  0xe9   :  { %v136_v37 = vmax.f32 %v131_v35, 0.0 }
  0xea   :  { %v133_v38 = vpop.f32.mrf.mxu0 }
  0xeb   :  { %v137_v39 = vpack.c.bf16 %v136_v37, %v136_v37 }
  0xec   :  { %v779_v40 = vpop.f32.mrf.mxu0 }
  0xed   :  { %279 = vmatmul.mubr.bf16.vlgmr.msra.gmra.mxu1 %v137_v39 }
  0xee   :  { %796 = vmatprep.mubr.msk.bf16.mxu1 %vm949_vm0, %v948_v0  ;;  %781 = vmatpush3.bf16.msra.mxu1 %v864_v45 }
  0xef   :  { %782 = vmatprep.subr.bf16.mxu1 %v948_v0 }
  0xf2   :  { %783 = vmatpush3.bf16.msra.mxu1 %v865_v46 }
  0xf3   :  { %784 = vmatprep.subr.bf16.mxu1 %v948_v0 }
  0xf6   :  { %785 = vmatpush3.bf16.msra.mxu1 %v866_v47 }
  0xf7   :  { %786 = vmatprep.subr.bf16.mxu1 %v948_v0 }
  0xfa   :  { %787 = vmatpush3.bf16.msra.mxu1 %v867_v48 }
  0xfb   :  { %788 = vmatprep.subr.bf16.mxu1 %v948_v0 }
  0xfe   :  { %789 = vmatpush3.bf16.msra.mxu1 %v868_v49 }
  0xff   :  { %790 = vmatprep.subr.bf16.mxu1 %v948_v0 }
 0x102   :  { %791 = vmatpush3.bf16.msra.mxu1 %v869_v4 }
 0x103   :  { %792 = vmatprep.subr.bf16.mxu1 %v948_v0 }
 0x106   :  { %793 = vmatpush3.bf16.msra.mxu1 %v870_v5 }
 0x107   :  { %794 = vmatprep.subr.bf16.mxu1 %v948_v0 }
 0x10a   :  { %795 = vmatpush3.bf16.msra.mxu1 %v871_v6 }
 0x1ad   :  { %v280_v57 = vpop.f32.mrf.mxu1 }
 0x1ae   :  { %v281_v58 = vadd.f32 %v280_v57, %v159_v55 }
 0x1af   :  { %v282_v59 = vpop.f32.mrf.mxu1 }
 0x1b0   :  { %v283_v60 = vadd.f32 %v282_v59, %v163_v56  ;;  %v287_v61 = vmax.f32 %v281_v58, 0.0 }
 0x1b1   :  { %v284_v62 = vpop.f32.mrf.mxu1 }
 0x1b2   :  { %v288_v63 = vmax.f32 %v283_v60, 0.0  ;;  %v289_v3 = vpack.c.bf16 %v287_v61, %v287_v61 }
 0x1b3   :  { %v285_v1 = vpop.f32.mrf.mxu1 }
 0x1b4   :  { %v290_v2 = vpack.c.bf16 %v288_v63, %v288_v63 }
 0x1b6   :  { %458 = vmatprep.mubr.bf16.mxu0 %v290_v2 }
 0x1b7   :  { %459 = vmatmul.mubr.bf16.vlgmr.msra.gmra.mxu0 %v289_v3 }
 0x1b8   :  { %808 = vmatprep.mubr.msk.bf16.mxu0 %vm949_vm0, %v948_v0  ;;  %801 = vmatpush3.bf16.msra.mxu0 %v872_v7 }
 0x1b9   :  { %802 = vmatprep.subr.bf16.mxu0 %v948_v0 }
 0x1bc   :  { %803 = vmatpush3.bf16.msra.mxu0 %v873_v8 }
 0x1bd   :  { %804 = vmatprep.subr.bf16.mxu0 %v948_v0 }
 0x1c0   :  { %805 = vmatpush3.bf16.msra.mxu0 %v874_v18 }
 0x1c1   :  { %806 = vmatprep.subr.bf16.mxu0 %v948_v0  ;;  %v727_v0 = vld [vmem:[%s1111_s10] ss:$0 sm:$0xff] }
 0x1c4   :  { %807 = vmatpush3.bf16.msra.mxu0 %v875_v19 }
 0x277   :  { %v752_v9 = vpop.f32.mrf.mxu0 }
 0x279   :  { %v753_v11 = vpop.f32.mrf.mxu0 }
 0x27a   :  { %v754_v12 = vadd.f32 %v753_v11, %v752_v9 }
 0x27b   :  { %v755_v13 = vpop.f32.mrf.mxu0 }
 0x27c   :  { %v461_v14 = vadd.f32 %v754_v12, %v701_v10 }
 0x27d   :  { %v756_v15 = vpop.f32.mrf.mxu0 }
 0x27e   :  { %v466_v16 = vmax.f32 %v461_v14, 0.0 }
 0x280   :  { %v467_v17 = vpack.c.bf16 %v466_v16, %v466_v16 }
 0x282   :  { %797 = vmatmul.mubr.bf16.vlgmr.msra.gmra.mxu1 %v467_v17 }
 0x342   :  { %v573_v21 = vpop.f32.mrf.mxu1 }
 0x343   :  { %v574_v22 = vadd.f32 %v718_v20, %v573_v21 }
 0x344   :  { %v798_v23 = vpop.f32.mrf.mxu1 }
 0x345   :  { %v579_v24 = vmax.f32 %v574_v22, 0.0 }
 0x346   :  { %v576_v25 = vpop.f32.mrf.mxu1 }
 0x347   :  { %v580_v26 = vpack.c.bf16 %v579_v24, %v579_v24 }
 0x348   :  { %v799_v27 = vpop.f32.mrf.mxu1 }
 0x349   :  { %809 = vmatmul.mubr.msk.bf16.vlgmr.msra.gmra.mxu0 %vm620_vm2, %v580_v26 }
 0x409   :  { %v658_v28 = vpop.f32.mrf.mxu0 }
 0x40a   :  { %v659_v29 = vadd.f32 %v727_v0, %v658_v28 }
 0x40b   :  { %v810_v30 = vpop.f32.mrf.mxu0 }
 0x40c   :  { %664 = vst [vmem:[#allocation7] sm:$0xff] %v659_v29 }
 0x40d   :  { %v661_v31 = vpop.f32.mrf.mxu0 }
 0x40e   :  { %927 = shalt.err (!%p924_p0)
}
 0x40f   :  { %674 = dma.vmem_to_hbm [thread:$0]  %s672_s9, 128, %s1112_s11, [#allocation4]   ;;  %v811_v32 = vpop.f32.mrf.mxu0 }
 0x410   :  { %940 = dma.done.wait [#allocation4], 128  }
 0x411   :  { %941 = vsyncadd [#allocation4], 4294967168 }
 0x412   :  { %678 = vsyncpa [#allocation3], 1 }
 0x413   :  { %679 = vsyncpa [#allocation6], 1 }
 0x414   :  { %680 = vsyncpa [#allocation4], 1 }

</bundles_post_ra>
